<compile_context>
chip_gen: v6e
topology: v6e:2x2x1
jax: 0.10.0
libtpu: 0.0.40
codegen_flags: <defaults>
</compile_context>

<pallas_src>
import functools

import jax
import jax.numpy as jnp
from jax.experimental import pallas as pl
from jax.experimental.pallas import tpu as pltpu


LANE = 128        # lane width: pad channel dims to this
ROW_TILE = 128    # A_hat row / reduction tile (multiple of 8 sublanes)


# ----------------------------------------------------------------------------
# Helpers
# ----------------------------------------------------------------------------
def _round_up(x, m):
    return ((x + m - 1) // m) * m


def _pad2(a, rows, cols):
    return jnp.pad(a, ((0, rows - a.shape[0]), (0, cols - a.shape[1])))


def _safe_neg_pow(deg, p):
    # deg ** (-p) with 0 -> 0 (padded / isolated nodes), no transient inf.
    pos = deg > 0
    return jnp.where(pos, 1.0, 0.0) * jnp.where(pos, deg, 1.0) ** (-p)


# ----------------------------------------------------------------------------
# Plain-JAX glue: dense DirectedGCNConv normalization
#   A_hat[col, row] += D_in(col)^{-alpha} * D_out(row)^{-beta}
# (self-loops added first; aggregation target is `col`, source is `row`)
# ----------------------------------------------------------------------------
def directed_gcn_norm_dense(edge_index, num_nodes, padded_nodes, *,
                            alpha=0.5, beta=0.5, self_loops=True,
                            dtype=jnp.bfloat16):
    row, col = edge_index[0], edge_index[1]
    if self_loops:
        loop = jnp.arange(num_nodes, dtype=edge_index.dtype)
        row = jnp.concatenate([row, loop])
        col = jnp.concatenate([col, loop])
    ones = jnp.ones(row.shape, jnp.float32)
    in_deg = jnp.zeros((padded_nodes,), jnp.float32).at[col].add(ones)
    out_deg = jnp.zeros((padded_nodes,), jnp.float32).at[row].add(ones)
    in_inv = _safe_neg_pow(in_deg, alpha)
    out_inv = _safe_neg_pow(out_deg, beta)
    norm = in_inv[col] * out_inv[row]
    a_hat = jnp.zeros((padded_nodes, padded_nodes), jnp.float32)
    a_hat = a_hat.at[col, row].add(norm)
    return a_hat.astype(dtype)


# ----------------------------------------------------------------------------
# Fused DirectedGCNConv Pallas kernel:  out = A_hat @ (X @ W + b)  [+ ReLU]
# Grid: (i = output row tiles  [parallel],  k = N-reduction tiles [arbitrary])
# ----------------------------------------------------------------------------
def _dgcn_kernel(a_ref, x_ref, w_ref, b_ref, o_ref, acc_ref, *, relu):
    k = pl.program_id(1)

    @pl.when(k == 0)
    def _():
        acc_ref[...] = jnp.zeros_like(acc_ref)

    # Feature transform for this reduction tile: Y[k] = X[k] @ W + b
    # (bf16 operands -> f32 accumulate; bias stays f32)
    y = jnp.dot(x_ref[...], w_ref[...], preferred_element_type=jnp.float32)
    y = y + b_ref[...]

    # Propagation: acc[i] += A[i, k] @ Y[k]   (bf16 operands, f32 accumulate)
    acc_ref[...] += jnp.dot(a_ref[...], y.astype(a_ref.dtype),
                            preferred_element_type=jnp.float32)

    @pl.when(k == pl.num_programs(1) - 1)
    def _():
        out = acc_ref[...]
        if relu:
            out = jnp.maximum(out, 0.0)
        o_ref[...] = out.astype(o_ref.dtype)


def directed_gcn_conv(a_hat, x, w, b, *, relu, out_dtype,
                      tm=ROW_TILE, tk=ROW_TILE):
    """One DirectedGCNConv layer on padded, lane-dense operands.

    a_hat: (Np, Np) bf16  x: (Np, Cin_p) bf16  w: (Cin_p, Cout_p) bf16
    b: (1, Cout_p) f32    ->  (Np, Cout_p) out_dtype
    """
    np_, _ = a_hat.shape
    cin_p, cout_p = w.shape
    grid = (np_ // tm, np_ // tk)

    return pl.pallas_call(
        functools.partial(_dgcn_kernel, relu=relu),
        out_shape=jax.ShapeDtypeStruct((np_, cout_p), out_dtype),
        grid_spec=pltpu.PrefetchScalarGridSpec(
            num_scalar_prefetch=0,
            grid=grid,
            in_specs=[
                pl.BlockSpec((tm, tk), lambda i, k: (i, k)),         # A_hat tile
                pl.BlockSpec((tk, cin_p), lambda i, k: (k, 0)),      # X reduction tile
                pl.BlockSpec((cin_p, cout_p), lambda i, k: (0, 0)),  # W (resident)
                pl.BlockSpec((1, cout_p), lambda i, k: (0, 0)),      # bias (resident)
            ],
            out_specs=pl.BlockSpec((tm, cout_p), lambda i, k: (i, 0)),
            scratch_shapes=[pltpu.VMEM((tm, cout_p), jnp.float32)],
        ),
        compiler_params=pltpu.CompilerParams(
            dimension_semantics=("parallel", "arbitrary"),
            vmem_limit_bytes=32 * 1024 * 1024,
        ),
    )(a_hat, x, w, b)


# ----------------------------------------------------------------------------
# EdgeSourceEncoder: parameters + forward
# ----------------------------------------------------------------------------
def init_edge_source_encoder_params(key, in_channels, hidden_channels,
                                    out_channels):
    # torch.nn.Linear default init: U(-1/sqrt(fan_in), 1/sqrt(fan_in)).
    # Weights stored as (in, out) so the kernel computes X @ W + b directly.
    def linear_init(k, fan_in, fan_out):
        kw, kb = jax.random.split(k)
        bound = 1.0 / float(fan_in) ** 0.5
        w = jax.random.uniform(kw, (fan_in, fan_out), jnp.float32, -bound, bound)
        bias = jax.random.uniform(kb, (fan_out,), jnp.float32, -bound, bound)
        return w, bias

    k1, k4 = jax.random.split(key)
    return {
        "conv1": linear_init(k1, in_channels, hidden_channels),
        "conv4": linear_init(k4, hidden_channels, out_channels),
    }


def edge_source_encoder_forward(params, x, edge_index, *, alpha=0.5, beta=0.5,
                                self_loops=True):
    n, c_in = x.shape
    w1, b1 = params["conv1"]
    w4, b4 = params["conv4"]
    c_hid, c_out = w1.shape[1], w4.shape[1]

    # Pad to lane/sublane-dense shapes (zero padding is exact: padded nodes
    # have zero A_hat rows/cols, padded channels have zero W/b entries).
    np_ = _round_up(max(n, ROW_TILE), ROW_TILE)
    cin_p = _round_up(c_in, LANE)
    chid_p = _round_up(c_hid, LANE)
    cout_p = _round_up(c_out, LANE)

    # conv1 uses edge_index; conv4 uses the reversed graph (torch.flip dim 0).
    a1 = directed_gcn_norm_dense(edge_index, n, np_, alpha=alpha, beta=beta,
                                 self_loops=self_loops, dtype=jnp.bfloat16)
    a2 = directed_gcn_norm_dense(jnp.flip(edge_index, axis=0), n, np_,
                                 alpha=alpha, beta=beta,
                                 self_loops=self_loops, dtype=jnp.bfloat16)

    x_p = _pad2(x, np_, cin_p).astype(jnp.bfloat16)
    w1_p = _pad2(w1, cin_p, chid_p).astype(jnp.bfloat16)
    b1_p = _pad2(b1.reshape(1, -1), 1, chid_p).astype(jnp.float32)
    w4_p = _pad2(w4, chid_p, cout_p).astype(jnp.bfloat16)
    b4_p = _pad2(b4.reshape(1, -1), 1, cout_p).astype(jnp.float32)

    # conv1(x, edge_index).relu()
    h = directed_gcn_conv(a1, x_p, w1_p, b1_p, relu=True,
                          out_dtype=jnp.bfloat16)
    # conv4(h, flipped edge_index)
    out = directed_gcn_conv(a2, h, w4_p, b4_p, relu=False,
                            out_dtype=jnp.float32)
    return out[:n, :c_out]


# ----------------------------------------------------------------------------
# Pure-JAX reference (f32, unpadded) for correctness checking
# ----------------------------------------------------------------------------
def _reference_conv(x, edge_index, w, b, *, alpha, beta, relu):
    n = x.shape[0]
    a_hat = directed_gcn_norm_dense(edge_index, n, n, alpha=alpha, beta=beta,
                                    self_loops=True, dtype=jnp.float32)
    y = x @ w + b.reshape(1, -1)
    out = a_hat @ y
    return jnp.maximum(out, 0.0) if relu else out


def reference_forward(params, x, edge_index, *, alpha=0.5, beta=0.5):
    w1, b1 = params["conv1"]
    w4, b4 = params["conv4"]
    h = _reference_conv(x, edge_index, w1, b1, alpha=alpha, beta=beta,
                        relu=True)
    return _reference_conv(h, jnp.flip(edge_index, axis=0), w4, b4,
                           alpha=alpha, beta=beta, relu=False)


# ----------------------------------------------------------------------------
if __name__ == "__main__":
    key = jax.random.PRNGKey(0)
    k_x, k_e, k_p = jax.random.split(key, 3)

    N = 200          # number of nodes (padded to 256 internally -> 2x2 grid)
    C_IN = 16        # in_channels
    C_HID = 32       # hidden_channels
    C_OUT = 8        # out_channels
    E = 400          # directed edges

    x = jax.random.normal(k_x, (N, C_IN), jnp.float32)
    src = jax.random.randint(k_e, (E,), 0, N, jnp.int32)
    dst = jax.random.randint(jax.random.fold_in(k_e, 1), (E,), 0, N, jnp.int32)
    edge_index = jnp.stack([src, dst], axis=0)

    params = init_edge_source_encoder_params(k_p, C_IN, C_HID, C_OUT)

    out = edge_source_encoder_forward(params, x, edge_index)
    jax.block_until_ready(out)
    assert out.shape == (N, C_OUT)

    # Validate the bf16 Pallas path against the f32 pure-JAX reference.
    ref = reference_forward(params, x, edge_index)
    rel_err = float(jnp.max(jnp.abs(out - ref)) /
                    (jnp.max(jnp.abs(ref)) + 1e-6))
    assert rel_err < 0.05, f"relative error too large: {rel_err}"

    print("KERNEL_OK")
</pallas_src>

<mosaic_0001>
module attributes {stable_mosaic.version = 11 : i64} {
  func.func @_dgcn_kernel(%arg0: i32, %arg1: i32, %arg2: memref<128x128xbf16, #tpu.memory_space<vmem>>, %arg3: memref<128x128xbf16, #tpu.memory_space<vmem>>, %arg4: memref<128x128xbf16, #tpu.memory_space<vmem>>, %arg5: memref<1x128xf32, #tpu.memory_space<vmem>>, %arg6: memref<128x128xbf16, #tpu.memory_space<vmem>>, %arg7: memref<128x128xf32, #tpu.memory_space<vmem>>) attributes {dimension_semantics = [#tpu.dimension_semantics<parallel>, #tpu.dimension_semantics<arbitrary>], iteration_bounds = array<i64: 2, 2>, scalar_prefetch = 0 : i64, scratch_operands = 1 : i64, tpu.core_type = #tpu.core_type<tc>, window_params = [{transform_indices = @transform_0, window_bounds = array<i64: 128, 128>}, {transform_indices = @transform_1, window_bounds = array<i64: 128, 128>}, {pipeline_mode = #tpu.pipeline_mode<synchronous>, transform_indices = @transform_2, window_bounds = array<i64: 128, 128>}, {pipeline_mode = #tpu.pipeline_mode<synchronous>, transform_indices = @transform_3, window_bounds = array<i64: 1, 128>}, {transform_indices = @transform_4, window_bounds = array<i64: 128, 128>}]} {
    %c0_i32 = arith.constant 0 : i32
    %0 = arith.cmpi eq, %arg1, %c0_i32 : i32
    %1 = arith.extui %0 : i1 to i32
    %c0_i32_0 = arith.constant 0 : i32
    %2 = arith.cmpi ne, %1, %c0_i32_0 : i32
    scf.if %2 {
      %cst_14 = arith.constant 0.000000e+00 : f32
      %18 = vector.broadcast %cst_14 : f32 to vector<128x128xf32>
      %c0_15 = arith.constant 0 : index
      %c0_16 = arith.constant 0 : index
      %19 = vector.load %arg7[%c0_15, %c0_16] : memref<128x128xf32, #tpu.memory_space<vmem>>, vector<128x128xf32>
      tpu.vector_store %arg7[%c0_15, %c0_16], %18 {strides = array<i32>} : memref<128x128xf32, #tpu.memory_space<vmem>>, vector<128x128xf32>,
    } else {
    }
    %c0 = arith.constant 0 : index
    %c0_1 = arith.constant 0 : index
    %3 = vector.load %arg3[%c0, %c0_1] : memref<128x128xbf16, #tpu.memory_space<vmem>>, vector<128x128xbf16>
    %c0_2 = arith.constant 0 : index
    %c0_3 = arith.constant 0 : index
    %4 = vector.load %arg4[%c0_2, %c0_3] : memref<128x128xbf16, #tpu.memory_space<vmem>>, vector<128x128xbf16>
    %cst = arith.constant dense<0.000000e+00> : vector<128x128xf32>
    %5 = tpu.matmul %3, %4, %cst {dimension_numbers = #tpu.dot_dimension_numbers<[1], [0], [0], [1], [0, 0, 1, 1], [], []>} : vector<128x128xbf16>, vector<128x128xbf16>, vector<128x128xf32> -> vector<128x128xf32>
    %c0_4 = arith.constant 0 : index
    %c0_5 = arith.constant 0 : index
    %6 = vector.load %arg5[%c0_4, %c0_5] : memref<1x128xf32, #tpu.memory_space<vmem>>, vector<1x128xf32>
    %7 = vector.broadcast %6 : vector<1x128xf32> to vector<128x128xf32>
    %8 = arith.addf %5, %7 : vector<128x128xf32>
    %c0_6 = arith.constant 0 : index
    %c0_7 = arith.constant 0 : index
    %9 = vector.load %arg7[%c0_6, %c0_7] : memref<128x128xf32, #tpu.memory_space<vmem>>, vector<128x128xf32>
    %c0_8 = arith.constant 0 : index
    %c0_9 = arith.constant 0 : index
    %10 = vector.load %arg2[%c0_8, %c0_9] : memref<128x128xbf16, #tpu.memory_space<vmem>>, vector<128x128xbf16>
    %11 = arith.truncf %8 : vector<128x128xf32> to vector<128x128xbf16>
    %cst_10 = arith.constant dense<0.000000e+00> : vector<128x128xf32>
    %12 = tpu.matmul %10, %11, %cst_10 {dimension_numbers = #tpu.dot_dimension_numbers<[1], [0], [0], [1], [0, 0, 1, 1], [], []>} : vector<128x128xbf16>, vector<128x128xbf16>, vector<128x128xf32> -> vector<128x128xf32>
    %13 = arith.addf %9, %12 : vector<128x128xf32>
    %c0_11 = arith.constant 0 : index
    %c0_12 = arith.constant 0 : index
    %14 = vector.load %arg7[%c0_11, %c0_12] : memref<128x128xf32, #tpu.memory_space<vmem>>, vector<128x128xf32>
    tpu.vector_store %arg7[%c0_11, %c0_12], %13 {strides = array<i32>} : memref<128x128xf32, #tpu.memory_space<vmem>>, vector<128x128xf32>,
    %c1_i32 = arith.constant 1 : i32
    %15 = arith.cmpi eq, %arg1, %c1_i32 : i32
    %16 = arith.extui %15 : i1 to i32
    %c0_i32_13 = arith.constant 0 : i32
    %17 = arith.cmpi ne, %16, %c0_i32_13 : i32
    scf.if %17 {
      %c0_14 = arith.constant 0 : index
      %c0_15 = arith.constant 0 : index
      %18 = vector.load %arg7[%c0_14, %c0_15] : memref<128x128xf32, #tpu.memory_space<vmem>>, vector<128x128xf32>
      %cst_16 = arith.constant 0.000000e+00 : f32
      %19 = vector.broadcast %cst_16 : f32 to vector<128x128xf32>
      %20 = arith.maximumf %18, %19 : vector<128x128xf32>
      %21 = arith.truncf %20 : vector<128x128xf32> to vector<128x128xbf16>
      %c0_17 = arith.constant 0 : index
      %c0_18 = arith.constant 0 : index
      %22 = vector.load %arg6[%c0_17, %c0_18] : memref<128x128xbf16, #tpu.memory_space<vmem>>, vector<128x128xbf16>
      tpu.vector_store %arg6[%c0_17, %c0_18], %21 {strides = array<i32>} : memref<128x128xbf16, #tpu.memory_space<vmem>>, vector<128x128xbf16>,
    } else {
    }
    return
  }
  func.func @transform_0(%arg0: i32, %arg1: i32) -> (i32, i32) {
    %c0_i32 = arith.constant 0 : i32
    return %arg0, %arg1 : i32, i32
  }
  func.func @transform_1(%arg0: i32, %arg1: i32) -> (i32, i32) {
    %c0_i32 = arith.constant 0 : i32
    %c0_i32_0 = arith.constant 0 : i32
    return %arg1, %c0_i32 : i32, i32
  }
  func.func @transform_2(%arg0: i32, %arg1: i32) -> (i32, i32) {
    %c0_i32 = arith.constant 0 : i32
    %c0_i32_0 = arith.constant 0 : i32
    %c0_i32_1 = arith.constant 0 : i32
    return %c0_i32, %c0_i32_0 : i32, i32
  }
  func.func @transform_3(%arg0: i32, %arg1: i32) -> (i32, i32) {
    %c0_i32 = arith.constant 0 : i32
    %c0_i32_0 = arith.constant 0 : i32
    %c0_i32_1 = arith.constant 0 : i32
    return %c0_i32, %c0_i32_0 : i32, i32
  }
  func.func @transform_4(%arg0: i32, %arg1: i32) -> (i32, i32) {
    %c0_i32 = arith.constant 0 : i32
    %c0_i32_0 = arith.constant 0 : i32
    return %arg0, %c0_i32 : i32, i32
  }
}

</mosaic_0001>

<bundles_post_ra>
// kernel: tpu_custom_call.1
= control target key start
LH: loop header
LB: loop body
LE: loop exit
PB: predicated region body
PF: predicated region fallthrough
CT: control target
= control target key end

     0   :  { %s2018_s0 = inlined_call_operand.hbm [shape: bf16[256,256], index: 0, kind: input, shape index: {}]   ;;  %s2019_s1 = inlined_call_operand.hbm [shape: bf16[256,128], index: 1, kind: input, shape index: {}]   ;;  %s2020_s2 = inlined_call_operand.hbm [shape: bf16[128,128], index: 2, kind: input, shape index: {}]   ;;  %s2021_s3 = inlined_call_operand.vmem [shape: f32[1,128], index: 3, kind: input, shape index: {}]   ;;  %s2022_s4 = inlined_call_operand.hbm [shape: bf16[256,128], index: 4, kind: output, shape index: {}]  }
   0x1   :  { %2042 = sst [smem:[#allocation23_spill]] %s2020_s2 }
   0x2   :  { %2043 = sst [smem:[#allocation24_spill]] %s2021_s3 }
   0x3   :  { %2044 = sst [smem:[#allocation25_spill]] %s2022_s4 }
   0x4   :  { %9 = vsyncpa [#allocation4], 0 }
   0x5   :  { %11 = vsyncpa [#allocation4 + $0x1], 0 }
   0x6   :  { %12 = vsyncpa [#allocation7], 0 }
   0x7   :  { %14 = vsyncpa [#allocation7 + $0x1], 0 }
   0x8   :  { %15 = vsyncpa [#allocation5], 0 }
   0x9   :  { %17 = vsyncpa [#allocation5 + $0x1], 0  ;;  %s1677_s15 = smov 0   ;;  %s1679_s16 = smov 0  }
   0xa   :  { %s1681_s17 = smov 0   ;;  %s1683_s18 = smov 0  }
   0xb   :  { %s1685_s19 = smov 0   ;;  %s1687_s20 = smov 0  }
   0xc   :  { %s1689_s21 = smov 0   ;;  %s1691_s22 = smov 0  }
   0xd   :  { %s1693_s23 = smov 0   ;;  %s1695_s24 = smov 0  }
   0xe   :  { %s1697_s25 = smov 0   ;;  %s1699_s26 = smov 0  }
   0xf   :  { %s1701_s27 = smov 0   ;;  %s1703_s28 = smov 0  }
  0x10 LB: > { %2045 = sst [smem:[#allocation14_spill]] %s1588_s15  ;;  %s1744_s29 = sadd.s32 4294967295, %s1640_s28   ;;  %s1640_s28 = sphi %s1703_s28, %s23_s28   ;;  %s1636_s27 = sphi %s1701_s27, %s2100_s27   ;;  %s1632_s26 = sphi %s1699_s26, %s2099_s26   ;;  %s1628_s25 = sphi %s1697_s25, %s2098_s25   ;;  %s1624_s24 = sphi %s1695_s24, %s2097_s24   ;;  %s1620_s23 = sphi %s1693_s23, %s2096_s23   ;;  %s1616_s22 = sphi %s1691_s22, %s2095_s22   ;;  %s1612_s21 = sphi %s1689_s21, %s2094_s21   ;;  %s1608_s20 = sphi %s1687_s20, %s2093_s20   ;;  %s1604_s19 = sphi %s1685_s19, %s2092_s19   ;;  %s1600_s18 = sphi %s1683_s18, %s2091_s18   ;;  %s1596_s17 = sphi %s1681_s17, %s2090_s17   ;;  %s1592_s16 = sphi %s1679_s16, %s2089_s16   ;;  %s1588_s15 = sphi %s1677_s15, %s2088_s15  }
  0x11   : > { %2046 = sst [smem:[#allocation15_spill]] %s1592_s16  ;;  %s1008_s30 = sadd.s32 4294967294, %s1640_s28  }
  0x12   : > { %2047 = sst [smem:[#allocation16_spill]] %s1624_s24  ;;  %p57_p0 = scmp.ne.s32.totalorder %s1616_s22, %s1612_s21 }
  0x13   : > { %2048 = sst [smem:[#allocation17_spill]] %s1628_s25  ;;  %p2041_p1 = scmp.eq.s32.totalorder %s1744_s29, 0 }
  0x14   : > { %2049 = sst [smem:[#allocation18_spill]] %s1744_s29  ;;  %p83_p2 = scmp.ne.s32.totalorder %s1604_s19, %s1600_s18 }
  0x15   : > { %p1753_p3 = por %p2041_p1, %p57_p0  ;;  %p148_p4 = scmp.ne.s32.totalorder %s1596_s17, %s1592_s16 }
  0x16   : > { %p1761_p5 = por %p83_p2, %p2041_p1  ;;  %p149_p6 = scmp.eq.s32.totalorder %s1744_s29, 3 }
  0x17   : > { %p154_p7 = scmp.ne.s32.totalorder %s1592_s16, %s1588_s15  ;;  %p155_p8 = scmp.eq.s32.totalorder %s1008_s30, 3 }
  0x18   : > { %s2051_s7 = scalar_select %p1761_p5, 1, 0 }
  0x19   : > { %p1768_p9 = por %p149_p6, %p148_p4  ;;  %p1009_p10 = scmp.ge.s32.totalorder %s1640_s28, 1 }
  0x1a   : > { %2052 = sst [smem:[#allocation19_spill]] %s2051_s7  ;;  %p1773_p11 = por %p155_p8, %p154_p7 }
  0x1b   : > { %s2053_s8 = scalar_select %p1768_p9, 1, 0 }
  0x1c   : > { %s2055_s9 = scalar_select %p1773_p11, 1, 0 }
  0x1d   : > { %2054 = sst [smem:[#allocation20_spill]] %s2053_s8  ;;  %p162_p12 = scmp.lt.s32.totalorder %s1640_s28, 5 }
  0x1e   : > { %2056 = sst [smem:[#allocation21_spill]] %s2055_s9  ;;  %s1642_s11 = smov [#allocation8]  }
  0x1f   : > { %p1778_p13 = pnand %p1009_p10, %p162_p12  ;;  %s174_s12 = sshll.u32 %s1642_s11, 4  ;;  %s175_s12 = int_to_ptr.vmem [resolvable:$true] %s174_s12 }
  0x20   : > { %s1417_s13 = scalar_lea.vmem %s175_s12, 1024  ;;  %p1425_p9 = scmp.lt.s32.totalorder %s175_s12, %s175_s12 }
  0x21   : > { %p1244_p0 = pneg %p1778_p13  ;;  %p1418_p6 = scmp.ne.s32.totalorder %s175_s12, %s1417_s13 }
  0x22   : > { %p1426_p11 = scmp.lt.s32.totalorder %s1417_s13, %s1417_s13 }
  0x23   : > { %p1245_p2 = pnand %p1244_p0, %p2041_p1 }
  0x24   : > { %p1427_p5 = por %p1426_p11, %p1425_p9 }
  0x25   : > { %p1408_p4 = pneg %p1245_p2 }
  0x27   : > { %p1420_p7 = pnand %p1418_p6, %p1408_p4 }
  0x29   : > { %p1421_p8 = pneg %p1420_p7 }
  0x2b   : > { %p1428_p10 = pnand %p1427_p5, %p1421_p8 }
  0x2d   : > { %1431 = shalt.err (!%p1428_p10)
}
  0x2e   : > { %s2026_s14 = smov 64   ;;  %s2028_s18 = smov 4  }
  0x2f   : > { %s2058_s2 = sld [smem:[#allocation23_spill]]  ;;  %s32_s11 = sadd.s32 1, %s1632_s26 }
  0x30   : > { %p33_p5 = scmp.ge.s32.totalorder %s32_s11, 2  ;;  %s35_s13 = sadd.s32 1, %s1636_s27 }
  0x31   : > { %s44_s5 = sadd.s32 1, %s1620_s23  ;;  %p51_p9 = scmp.ne.s32.totalorder %s1620_s23, %s1616_s22 }
  0x32   : > { %s2102_s11 = smov (%p33_p5, %s32_s11), 0  ;;  %s2104_s13 = smov (!%p33_p5, %s35_s13), %s1636_s27 }
  0x33   : > { %2059 = sst [smem:[#allocation22_spill]] %s2102_s11  ;;  %s1802_s9 = ssub.s32 %s1632_s26, %s2102_s11 }
  0x34   : > { %p52_p11 = scmp.eq.s32.totalorder %s1640_s28, 0  ;;  %p37_p12 = scmp.ge.s32.totalorder %s2104_s13, 2 }
  0x35   : > { %1247 = dma.hbm_to_vmem [thread:$0]  (!%p1245_p2), %s2058_s2, 1024, %s175_s12, [#allocation7], %s2026_s14, %s2026_s14, %s2028_s18  }
  0x36   : > { %p68_p0 = scmp.eq.s32.totalorder %s1802_s9, 0  ;;  %p1808_p2 = por %p52_p11, %p51_p9 }
  0x37   : > { %p1260_p4 = scmp.lt.s32.totalorder %s1640_s28, 4  ;;  %s2106_s13 = smov (%p37_p12, %s2104_s13), 0 }
  0x38   : > { %s191_s21 = sand.u32 1, %s1620_s23   ;;  %s1072_s30 = sshll.u32 %s1636_s27, 5 }
  0x39   : > { %s39_s14 = ssub.s32 %s1636_s27, %s2106_s13  ;;  %s1012_s2 = sshll.u32 %s191_s21, 6 }
  0x3a   : > { %s41_s18 = sor.u32 %s1802_s9, %s39_s14  ;;  %p136_p6 = scmp.eq.s32.totalorder %s39_s14, 0 }
  0x3b   : > { %p42_p7 = scmp.eq.s32.totalorder %s41_s18, 0  ;;  %s2061_s11 = sadd.s32 1, %s1596_s17 }
  0x3c   : > { %s1823_s15 = scalar_select %p136_p6, %s1596_s17, %s2061_s11  }
  0x3d   : > { %s1826_s4 = scalar_select %p42_p7, %s1620_s23, %s44_s5  }
  0x3e   : > { %s201_s8 = sadd.s32 %s1632_s26, %s1072_s30  ;;  %s195_s3 = scalar_lea.vmem [#allocation3], %s1012_s2 }
  0x3f   : > { %s1015_s25 = sshll.u32 %s201_s8, 6  ;;  %s204_s24 = sshll.u32 %s195_s3, 4  ;;  %s205_s24 = int_to_ptr.vmem [resolvable:$true] %s204_s24 }
  0x40   : > { %s203_s29 = scalar_lea.hbm %s2018_s0, %s1015_s25  ;;  %p1836_p8 = pnand %p1260_p4, %p1808_p2 }
  0x41   : > { %s192_s11 = scalar_lea.sflag [#allocation4], %s191_s21  ;;  %s1445_s5 = scalar_lea.vmem %s205_s24, 1024 }
  0x42   : > { %p1434_p10 = pneg %p1836_p8  ;;  %p1446_p5 = scmp.ne.s32.totalorder %s205_s24, %s1445_s5 }
  0x43   : > { %s1645_s2 = smov [#allocation3]  }
  0x44   : > { %p1448_p9 = pnand %p1446_p5, %p1434_p10  ;;  %s1450_s3 = sshll.u32 %s1645_s2, 4  ;;  %s1451_s3 = int_to_ptr.vmem [resolvable:$false] %s1450_s3 }
  0x45   : > { %s1452_s16 = scalar_lea.vmem %s1451_s3, 2048  ;;  %p1453_p6 = scmp.lt.s32.totalorder %s205_s24, %s1451_s3 }
  0x46   : > { %p1449_p12 = pneg %p1448_p9  ;;  %p1454_p7 = scmp.lt.s32.totalorder %s1452_s16, %s1445_s5 }
  0x48   : > { %p1455_p1 = por %p1454_p7, %p1453_p6 }
  0x4a   : > { %p1456_p2 = pnand %p1455_p1, %p1449_p12 }
  0x4c   : > { %1459 = shalt.err (!%p1456_p2)
}
  0x4d   : > { %s1646_s25 = smov 128   ;;  %s2063_s7 = smov 4  }
  0x4e   : > { %s2064_s8 = smov 64   ;;  %s70_s12 = sadd.s32 1, %s1608_s20 }
  0x4f   : > { %1251 = dma.hbm_to_vmem [thread:$0]  (!%p1836_p8), %s203_s29, 1024, %s205_s24, %s192_s11, %s1646_s25, %s2064_s8, %s2063_s7  }
  0x50   : > { %p77_p10 = scmp.ne.s32.totalorder %s1608_s20, %s1604_s19  ;;  %s216_s30 = sand.u32 1, %s1608_s20  }
  0x51   : > { %s1853_s21 = scalar_select %p68_p0, %s1608_s20, %s70_s12  }
  0x52   : > { %p79_p1 = por %p77_p10, %p52_p11  ;;  %s1073_s14 = sshll.u32 %s1632_s26, 10 }
  0x53   : > { %s1016_s5 = sshll.u32 %s216_s30, 6  ;;  %s224_s16 = scalar_lea.hbm %s2019_s1, %s1073_s14 }
  0x54   : > { %p1864_p5 = pnand %p1260_p4, %p79_p1  ;;  %s218_s24 = scalar_lea.vmem [#allocation6], %s1016_s5 }
  0x55   : > { %s225_s29 = sshll.u32 %s218_s24, 4  ;;  %s2066_s9 = sand.u32 1, %s1640_s28   ;;  %s226_s29 = int_to_ptr.vmem [resolvable:$true] %s225_s29 }
  0x56   : > { %s215_s11 = scalar_lea.sflag [#allocation7], %s2066_s9  ;;  %p1462_p11 = pneg %p1864_p5 }
  0x57   : > { %s1473_s25 = scalar_lea.vmem %s226_s29, 1024  ;;  %s1647_s12 = smov [#allocation6]  }
  0x58   : > { %p1474_p0 = scmp.ne.s32.totalorder %s226_s29, %s1473_s25  ;;  %s1478_s30 = sshll.u32 %s1647_s12, 4  ;;  %s1479_s30 = int_to_ptr.vmem [resolvable:$false] %s1478_s30 }
  0x59   : > { %s1480_s14 = scalar_lea.vmem %s1479_s30, 2048  ;;  %p1481_p4 = scmp.lt.s32.totalorder %s226_s29, %s1479_s30 }
  0x5a   : > { %p1476_p8 = pnand %p1474_p0, %p1462_p11  ;;  %p1482_p12 = scmp.lt.s32.totalorder %s1480_s14, %s1473_s25 }
  0x5c   : > { %p1477_p9 = pneg %p1476_p8  ;;  %p1483_p6 = por %p1482_p12, %p1481_p4 }
  0x5e   : > { %p1484_p7 = pnand %p1483_p6, %p1477_p9 }
  0x60   : > { %1487 = shalt.err (!%p1484_p7)
}
  0x61   : > { %1254 = dma.hbm_to_vmem [thread:$0]  (!%p1864_p5), %s224_s16, 1024, %s226_s29, %s215_s11, %s2064_s8, %s2064_s8, %s2063_s7  }
  0x62   : > { %237 = sbr.rel (%p1778_p13) target bundleno = 696 (0x2b8), region = 36  ;;  %s239_s5 = sand.u32 (!%p1778_p13), 1, %s1616_s22  }
  0x63   : > { %s1020_s2 = sshll.u32 (!%p1778_p13), %s239_s5, 6  ;;  %s240_s3 = scalar_lea.sflag (!%p1778_p13), [#allocation4], %s239_s5 }
  0x64   : > { %s1880_s24 = scalar_lea.vmem (!%p1778_p13), [#allocation3], %s1020_s2 }
  0x67   : > { %1571 = dma.done.wait (%p1753_p3), %s240_s3, 1024  }
  0x68   : > { %1573 = vsyncadd (%p1753_p3), %s240_s3, 4294966272  ;;  %s2067_s18 = sld [smem:[#allocation18_spill]]  ;;  %s250_s7 = sand.u32 1, %s1604_s19  }
  0x69   : > { %s2068_s9 = sld [smem:[#allocation19_spill]]  ;;  %s1021_s8 = sshll.u32 %s250_s7, 6 }
  0x6a   : > { %s1888_s16 = scalar_lea.vmem [#allocation6], %s1021_s8 }
  0x6e   : > { %s248_s25 = sand.u32 1, %s2067_s18  }
  0x6f   : > { %s249_s10 = scalar_lea.sflag [#allocation7], %s248_s25  ;;  %p2069_p13 = scmp.ne.s32.totalorder %s2068_s9, 0 }
  0x71   : > { %1575 = dma.done.wait (%p2069_p13), %s249_s10, 1024  }
  0x72   : > { %1577 = vsyncadd (%p2069_p13), %s249_s10, 4294966272  ;;  %p2070_p2 = scmp.eq.s32.totalorder %s2067_s18, 0 }
  0x74   : > { %1579 = dma.done.wait (%p2070_p2), [#allocation7], 1024   ;;  %p2071_p10 = pmov %p2070_p2 }
  0x75   : > { %s2072_s6 = sld [smem:[#allocation15_spill]] }
  0x76   : > { %1581 = vsyncadd (%p2071_p10), [#allocation7], 4294966272  ;;  %s2073_s30 = sld [smem:[#allocation16_spill]] }
  0x7b   : > { %s283_s29 = sand.u32 1, %s2072_s6  }
  0x7c   : > { %s1023_s11 = sshll.u32 %s283_s29, 6  ;;  %p1024_p3 = scmp.ne.s32.totalorder %s2073_s30, 0 }
  0x7d   : > { %s1901_s12 = scalar_lea.vmem [#allocation9], %s1023_s11 }
  0x7e   : > { %293 = sbr.rel (%p1024_p3) target bundleno = 140 (0x8c), region = 52 }
  0x83   : > { %v1648_v0 = vmov 0.0  }
  0x84   : > { %294 = vst [vmem:[#allocation2 + $0x30] sm:$0xff] %v1648_v0  ;;  %295 = vst [vmem:[#allocation2] sm:$0xff] %v1648_v0 }
  0x85   : > { %296 = vst [vmem:[#allocation2 + $0x58] sm:$0xff] %v1648_v0  ;;  %297 = vst [vmem:[#allocation2 + $0x18] sm:$0xff] %v1648_v0 }
  0x86   : > { %298 = vst [vmem:[#allocation2 + $0x50] sm:$0xff] %v1648_v0  ;;  %299 = vst [vmem:[#allocation2 + $0x68] sm:$0xff] %v1648_v0 }
  0x87   : > { %300 = vst [vmem:[#allocation2 + $0x8] sm:$0xff] %v1648_v0  ;;  %301 = vst [vmem:[#allocation2 + $0x48] sm:$0xff] %v1648_v0 }
  0x88   : > { %302 = vst [vmem:[#allocation2 + $0x40] sm:$0xff] %v1648_v0  ;;  %303 = vst [vmem:[#allocation2 + $0x20] sm:$0xff] %v1648_v0 }
  0x89   : > { %304 = vst [vmem:[#allocation2 + $0x10] sm:$0xff] %v1648_v0  ;;  %305 = vst [vmem:[#allocation2 + $0x38] sm:$0xff] %v1648_v0 }
  0x8a   : > { %306 = vst [vmem:[#allocation2 + $0x60] sm:$0xff] %v1648_v0  ;;  %307 = vst [vmem:[#allocation2 + $0x70] sm:$0xff] %v1648_v0 }
  0x8b   : > { %308 = vst [vmem:[#allocation2 + $0x78] sm:$0xff] %v1648_v0  ;;  %309 = vst [vmem:[#allocation2 + $0x28] sm:$0xff] %v1648_v0 }
  0x8c PF: > { %v1382_v1 = vld [vmem:[#allocation8 + $0x38] sm:$0xff]   ;;  %v1383_v2 = vld [vmem:[#allocation8 + $0x30] sm:$0xff]   ;;  %v1384_v3 = vld [vmem:[#allocation8 + $0x28] sm:$0xff]   ;;  %s2074_s2 = sld [smem:[#allocation24_spill]] }
  0x8d   : > { %1170 = vmatprep.subr.bf16.mxu0 %v1382_v1  ;;  %v1385_v4 = vld [vmem:[#allocation8 + $0x20] sm:$0xff]   ;;  %v1386_v6 = vld [vmem:[#allocation8 + $0x18] sm:$0xff]   ;;  %v1387_v7 = vld [vmem:[#allocation8 + $0x10] sm:$0xff]   ;;  %s2075_s3 = sld [smem:[#allocation16_spill]] }
  0x8e   : > { %1171 = vmatpush3.bf16.msra.mxu0 %v1382_v1  ;;  %v1390_v5 = vld [vmem:[%s1888_s16] sm:$0xff]   ;;  %v1388_v8 = vld [vmem:[#allocation8 + $0x8] sm:$0xff]   ;;  %v1392_v11 = vld [vmem:[%s1888_s16 + $0x10] sm:$0xff]  }
  0x8f   : > { %1172 = vmatprep.subr.bf16.mxu0 %v1383_v2  ;;  %1186 = vmatprep.mubr.bf16.mxu0 %v1390_v5  ;;  %v1389_v9 = vld [vmem:[#allocation8] sm:$0xff]   ;;  %v1391_v10 = vld [vmem:[%s1888_s16 + $0x8] sm:$0xff]   ;;  %v1393_v12 = vld [vmem:[%s1888_s16 + $0x18] sm:$0xff]  }
  0x90   : > { %v1394_v13 = vld [vmem:[%s1888_s16 + $0x20] sm:$0xff]   ;;  %v1395_v14 = vld [vmem:[%s1888_s16 + $0x28] sm:$0xff]   ;;  %v1396_v15 = vld [vmem:[%s1888_s16 + $0x30] sm:$0xff]  }
  0x91   : > { %v1397_v16 = vld [vmem:[%s1888_s16 + $0x38] sm:$0xff]   ;;  %v1398_v17 = vld [vmem:[%s1880_s24] sm:$0xff]   ;;  %v1399_v59 = vld [vmem:[%s1880_s24 + $0x8] sm:$0xff]  }
  0x92   : > { %1173 = vmatpush3.bf16.msra.mxu0 %v1383_v2  ;;  %1218 = vmatprep.mubr.bf16.mxu1 %v1398_v17  ;;  %v1025_v32 = vld [vmem:[%s2074_s2] ss:$0 sm:$0xff]  ;;  %v1400_v60 = vld [vmem:[%s1880_s24 + $0x10] sm:$0xff]   ;;  %v1401_v61 = vld [vmem:[%s1880_s24 + $0x18] sm:$0xff]  }
  0x93   : > { %1174 = vmatprep.subr.bf16.mxu0 %v1384_v3  ;;  %v1402_v62 = vld [vmem:[%s1880_s24 + $0x20] sm:$0xff]   ;;  %v1403_v63 = vld [vmem:[%s1880_s24 + $0x28] sm:$0xff]   ;;  %v1404_v0 = vld [vmem:[%s1880_s24 + $0x30] sm:$0xff]   ;;  %p1050_p1 = scmp.ne.s32.totalorder %s2075_s3, 1 }
  0x94   : > { %v1405_v1 = vld [vmem:[%s1880_s24 + $0x38] sm:$0xff]  }
  0x95   : > { %v544_v2 = vld [vmem:[#allocation2 + $0x58] sm:$0xff] }
  0x96   : > { %1175 = vmatpush3.bf16.msra.mxu0 %v1384_v3 }
  0x97   : > { %1176 = vmatprep.subr.bf16.mxu0 %v1385_v4 }
  0x9a   : > { %1177 = vmatpush3.bf16.msra.mxu0 %v1385_v4  ;;  %v542_v4 = vld [vmem:[#allocation2 + $0x30] sm:$0xff] }
  0x9b   : > { %1178 = vmatprep.subr.bf16.mxu0 %v1386_v6 }
  0x9e   : > { %1179 = vmatpush3.bf16.msra.mxu0 %v1386_v6 }
  0x9f   : > { %1180 = vmatprep.subr.bf16.mxu0 %v1387_v7 }
  0xa2   : > { %1181 = vmatpush3.bf16.msra.mxu0 %v1387_v7  ;;  %v545_v7 = vld [vmem:[#allocation2 + $0x18] sm:$0xff] }
  0xa3   : > { %1182 = vmatprep.subr.bf16.mxu0 %v1388_v8 }
  0xa6   : > { %1183 = vmatpush3.bf16.msra.mxu0 %v1388_v8 }
  0xa7   : > { %1184 = vmatprep.subr.bf16.mxu0 %v1389_v9 }
  0xaa   : > { %1185 = vmatpush3.bf16.msra.mxu0 %v1389_v9 }
  0xad   : > { %1187 = vmatmul.mubr.bf16.vlgmr.msra.gmra.mxu0 %v1391_v10  ;;  %v543_v10 = vld [vmem:[#allocation2] sm:$0xff] }
  0xae   : > { %1190 = vmatprep.mubr.bf16.mxu0 %v1392_v11 }
  0xb5   : > { %1191 = vmatmul.mubr.bf16.gmra.mxu0 %v1393_v12 }
  0xb6   : > { %1194 = vmatprep.mubr.bf16.mxu0 %v1394_v13  ;;  %v548_v13 = vld [vmem:[#allocation2 + $0x8] sm:$0xff] }
  0xbd   : > { %1195 = vmatmul.mubr.bf16.gmra.mxu0 %v1395_v14 }
  0xbe   : > { %1198 = vmatprep.mubr.bf16.mxu0 %v1396_v15 }
  0xc5   : > { %1199 = vmatmul.mubr.bf16.gmra.mxu0 %v1397_v16  ;;  %v546_v16 = vld [vmem:[#allocation2 + $0x50] sm:$0xff] }
 0x16d   : > { %v1188_v18 = vpop.f32.mrf.mxu0 }
 0x16e   : > { %v488_v54 = vadd.f32 %v1188_v18, %v1025_v32 }
 0x16f   : > { %v479_v19 = vpop.f32.mrf.mxu0 }
 0x170   : > { %v480_v57 = vadd.f32 %v1025_v32, %v479_v19  ;;  %v549_v19 = vld [vmem:[#allocation2 + $0x48] sm:$0xff] }
 0x171   : > { %v1189_v20 = vpop.f32.mrf.mxu0 }
 0x172   : > { %v491_v52 = vadd.f32 %v1189_v20, %v1025_v32 }
 0x173   : > { %v482_v21 = vpop.f32.mrf.mxu0 }
 0x174   : > { %v575_v55 = vpack.c.bf16 %v491_v52, %v488_v54  ;;  %v483_v56 = vadd.f32 %v1025_v32, %v482_v21 }
 0x175   : > { %v1192_v22 = vpop.f32.mrf.mxu0 }
 0x176   : > { %v504_v48 = vadd.f32 %v1192_v22, %v1025_v32  ;;  %v574_v58 = vpack.c.bf16 %v483_v56, %v480_v57  ;;  %v547_v22 = vld [vmem:[#allocation2 + $0x68] sm:$0xff] }
 0x177   : > { %v495_v23 = vpop.f32.mrf.mxu0 }
 0x178   : > { %v496_v51 = vadd.f32 %v1025_v32, %v495_v23 }
 0x179   : > { %v1193_v24 = vpop.f32.mrf.mxu0 }
 0x17a   : > { %v507_v46 = vadd.f32 %v1193_v24, %v1025_v32 }
 0x17b   : > { %v498_v25 = vpop.f32.mrf.mxu0 }
 0x17c   : > { %v577_v49 = vpack.c.bf16 %v507_v46, %v504_v48  ;;  %v499_v50 = vadd.f32 %v1025_v32, %v498_v25  ;;  %v552_v25 = vld [vmem:[#allocation2 + $0x10] sm:$0xff] }
 0x17d   : > { %v1196_v26 = vpop.f32.mrf.mxu0  ;;  %v555_v46 = vld [vmem:[#allocation2 + $0x70] sm:$0xff] }
 0x17e   : > { %v520_v42 = vadd.f32 %v1196_v26, %v1025_v32  ;;  %v576_v53 = vpack.c.bf16 %v499_v50, %v496_v51 }
 0x17f   : > { %v511_v27 = vpop.f32.mrf.mxu0 }
 0x180   : > { %v512_v45 = vadd.f32 %v1025_v32, %v511_v27 }
 0x181   : > { %v1197_v28 = vpop.f32.mrf.mxu0 }
 0x182   : > { %v523_v40 = vadd.f32 %v1197_v28, %v1025_v32  ;;  %v550_v28 = vld [vmem:[#allocation2 + $0x40] sm:$0xff] }
 0x183   : > { %v514_v29 = vpop.f32.mrf.mxu0 }
 0x184   : > { %v579_v43 = vpack.c.bf16 %v523_v40, %v520_v42  ;;  %v515_v44 = vadd.f32 %v1025_v32, %v514_v29  ;;  %v554_v40 = vld [vmem:[#allocation2 + $0x60] sm:$0xff] }
 0x185   : > { %v1200_v30 = vpop.f32.mrf.mxu0 }
 0x186   : > { %v536_v34 = vadd.f32 %v1200_v30, %v1025_v32  ;;  %v578_v47 = vpack.c.bf16 %v515_v44, %v512_v45 }
 0x187   : > { %v527_v31 = vpop.f32.mrf.mxu0 }
 0x188   : > { %v528_v37 = vadd.f32 %v1025_v32, %v527_v31  ;;  %v553_v31 = vld [vmem:[#allocation2 + $0x38] sm:$0xff] }
 0x189   : > { %v1201_v33 = vpop.f32.mrf.mxu0 }
 0x18a   : > { %v539_v35 = vadd.f32 %v1201_v33, %v1025_v32 }
 0x18b   : > { %v530_v36 = vpop.f32.mrf.mxu0 }
 0x18c   : > { %v531_v38 = vadd.f32 %v1025_v32, %v530_v36  ;;  %v581_v39 = vpack.c.bf16 %v539_v35, %v536_v34  ;;  %v551_v34 = vld [vmem:[#allocation2 + $0x20] sm:$0xff] }
 0x18e   : > { %v580_v41 = vpack.c.bf16 %v531_v38, %v528_v37  ;;  %1202 = vmatprep.subr.bf16.mxu1 %v581_v39  ;;  %v556_v37 = vld [vmem:[#allocation2 + $0x78] sm:$0xff] }
 0x18f   : > { %1203 = vmatpush3.bf16.msra.mxu1 %v581_v39 }
 0x190   : > { %1204 = vmatprep.subr.bf16.mxu1 %v580_v41 }
 0x193   : > { %1205 = vmatpush3.bf16.msra.mxu1 %v580_v41 }
 0x194   : > { %1206 = vmatprep.subr.bf16.mxu1 %v579_v43 }
 0x197   : > { %1207 = vmatpush3.bf16.msra.mxu1 %v579_v43  ;;  %v557_v43 = vld [vmem:[#allocation2 + $0x28] sm:$0xff] }
 0x198   : > { %1208 = vmatprep.subr.bf16.mxu1 %v578_v47 }
 0x19b   : > { %1209 = vmatpush3.bf16.msra.mxu1 %v578_v47 }
 0x19c   : > { %1210 = vmatprep.subr.bf16.mxu1 %v577_v49 }
 0x19f   : > { %1211 = vmatpush3.bf16.msra.mxu1 %v577_v49 }
 0x1a0   : > { %1212 = vmatprep.subr.bf16.mxu1 %v576_v53 }
 0x1a3   : > { %1213 = vmatpush3.bf16.msra.mxu1 %v576_v53 }
 0x1a4   : > { %1214 = vmatprep.subr.bf16.mxu1 %v575_v55 }
 0x1a7   : > { %1215 = vmatpush3.bf16.msra.mxu1 %v575_v55 }
 0x1a8   : > { %1216 = vmatprep.subr.bf16.mxu1 %v574_v58 }
 0x1ab   : > { %1217 = vmatpush3.bf16.msra.mxu1 %v574_v58 }
 0x1ae   : > { %1219 = vmatmul.mubr.bf16.vlgmr.msra.gmra.mxu1 %v1399_v59 }
 0x1af   : > { %1222 = vmatprep.mubr.bf16.mxu1 %v1400_v60 }
 0x1b6   : > { %1223 = vmatmul.mubr.bf16.gmra.mxu1 %v1401_v61 }
 0x1b7   : > { %1226 = vmatprep.mubr.bf16.mxu1 %v1402_v62 }
 0x1be   : > { %1227 = vmatmul.mubr.bf16.gmra.mxu1 %v1403_v63 }
 0x1bf   : > { %1230 = vmatprep.mubr.bf16.mxu1 %v1404_v0 }
 0x1c6   : > { %1231 = vmatmul.mubr.bf16.gmra.mxu1 %v1405_v1 }
 0x26e   : > { %v1220_v3 = vpop.f32.mrf.mxu1 }
 0x26f   : > { %v729_v5 = vadd.f32 %v1220_v3, %v544_v2 }
 0x270   : > { %v664_v6 = vpop.f32.mrf.mxu1 }
 0x271   : > { %745 = vst [vmem:[#allocation2 + $0x58] sm:$0xff] %v729_v5  ;;  %v727_v8 = vadd.f32 %v664_v6, %v542_v4 }
 0x272   : > { %v1221_v9 = vpop.f32.mrf.mxu1 }
 0x273   : > { %743 = vst [vmem:[#allocation2 + $0x30] sm:$0xff] %v727_v8  ;;  %v730_v11 = vadd.f32 %v1221_v9, %v545_v7 }
 0x274   : > { %v667_v12 = vpop.f32.mrf.mxu1 }
 0x275   : > { %746 = vst [vmem:[#allocation2 + $0x18] sm:$0xff] %v730_v11  ;;  %v728_v14 = vadd.f32 %v667_v12, %v543_v10 }
 0x276   : > { %v1224_v15 = vpop.f32.mrf.mxu1 }
 0x277   : > { %744 = vst [vmem:[#allocation2] sm:$0xff] %v728_v14  ;;  %v733_v17 = vadd.f32 %v1224_v15, %v548_v13 }
 0x278   : > { %v680_v18 = vpop.f32.mrf.mxu1 }
 0x279   : > { %749 = vst [vmem:[#allocation2 + $0x8] sm:$0xff] %v733_v17  ;;  %v731_v20 = vadd.f32 %v680_v18, %v546_v16 }
 0x27a   : > { %v1225_v21 = vpop.f32.mrf.mxu1 }
 0x27b   : > { %747 = vst [vmem:[#allocation2 + $0x50] sm:$0xff] %v731_v20  ;;  %v734_v23 = vadd.f32 %v1225_v21, %v549_v19 }
 0x27c   : > { %v683_v24 = vpop.f32.mrf.mxu1 }
 0x27d   : > { %750 = vst [vmem:[#allocation2 + $0x48] sm:$0xff] %v734_v23  ;;  %v732_v26 = vadd.f32 %v683_v24, %v547_v22 }
 0x27e   : > { %v1228_v27 = vpop.f32.mrf.mxu1 }
 0x27f   : > { %748 = vst [vmem:[#allocation2 + $0x68] sm:$0xff] %v732_v26  ;;  %v737_v29 = vadd.f32 %v1228_v27, %v552_v25 }
 0x280   : > { %v696_v30 = vpop.f32.mrf.mxu1 }
 0x281   : > { %753 = vst [vmem:[#allocation2 + $0x10] sm:$0xff] %v737_v29  ;;  %v735_v32 = vadd.f32 %v696_v30, %v550_v28 }
 0x282   : > { %v1229_v33 = vpop.f32.mrf.mxu1 }
 0x283   : > { %751 = vst [vmem:[#allocation2 + $0x40] sm:$0xff] %v735_v32  ;;  %v738_v35 = vadd.f32 %v1229_v33, %v553_v31 }
 0x284   : > { %v699_v36 = vpop.f32.mrf.mxu1 }
 0x285   : > { %754 = vst [vmem:[#allocation2 + $0x38] sm:$0xff] %v738_v35  ;;  %v736_v38 = vadd.f32 %v699_v36, %v551_v34 }
 0x286   : > { %v1232_v39 = vpop.f32.mrf.mxu1 }
 0x287   : > { %752 = vst [vmem:[#allocation2 + $0x20] sm:$0xff] %v736_v38  ;;  %v741_v41 = vadd.f32 %v1232_v39, %v556_v37 }
 0x288   : > { %v712_v42 = vpop.f32.mrf.mxu1 }
 0x289   : > { %757 = vst [vmem:[#allocation2 + $0x78] sm:$0xff] %v741_v41  ;;  %v739_v44 = vadd.f32 %v712_v42, %v554_v40 }
 0x28a   : > { %v1233_v45 = vpop.f32.mrf.mxu1 }
 0x28b   : > { %755 = vst [vmem:[#allocation2 + $0x60] sm:$0xff] %v739_v44  ;;  %v742_v47 = vadd.f32 %v1233_v45, %v557_v43  ;;  %762 = sbr.rel (%p1050_p1) target bundleno = 668 (0x29c), region = 56 }
 0x28c   : > { %v715_v48 = vpop.f32.mrf.mxu1 }
 0x28d   : > { %758 = vst [vmem:[#allocation2 + $0x28] sm:$0xff] %v742_v47  ;;  %v740_v49 = vadd.f32 %v715_v48, %v555_v46 }
 0x28f   : > { %756 = vst [vmem:[#allocation2 + $0x70] sm:$0xff] %v740_v49 }
 0x290   : > { %v763_v50 = vld [vmem:[#allocation2 + $0x30] sm:$0xff]  ;;  %v764_v51 = vld [vmem:[#allocation2] sm:$0xff]  ;;  %v765_v52 = vld [vmem:[#allocation2 + $0x58] sm:$0xff] }
 0x291   : > { %v779_v53 = vmax.f32 %v763_v50, 0.0  ;;  %v780_v54 = vmax.f32 %v764_v51, 0.0  ;;  %v766_v55 = vld [vmem:[#allocation2 + $0x18] sm:$0xff]  ;;  %v781_v56 = vmax.f32 %v765_v52, 0.0  ;;  %v767_v57 = vld [vmem:[#allocation2 + $0x50] sm:$0xff]  ;;  %v768_v58 = vld [vmem:[#allocation2 + $0x68] sm:$0xff] }
 0x292   : > { %v782_v59 = vmax.f32 %v766_v55, 0.0  ;;  %v783_v60 = vmax.f32 %v767_v57, 0.0  ;;  %v784_v61 = vmax.f32 %v768_v58, 0.0  ;;  %v769_v62 = vld [vmem:[#allocation2 + $0x8] sm:$0xff]  ;;  %v771_v0 = vld [vmem:[#allocation2 + $0x40] sm:$0xff]  ;;  %v773_v6 = vld [vmem:[#allocation2 + $0x10] sm:$0xff] }
 0x293   : > { %v770_v63 = vld [vmem:[#allocation2 + $0x48] sm:$0xff]  ;;  %v1094_v1 = vpack.c.bf16 %v780_v54, %v779_v53  ;;  %v785_v2 = vmax.f32 %v769_v62, 0.0  ;;  %v772_v4 = vld [vmem:[#allocation2 + $0x20] sm:$0xff]  ;;  %v787_v5 = vmax.f32 %v771_v0, 0.0  ;;  %v774_v7 = vld [vmem:[#allocation2 + $0x38] sm:$0xff]  ;;  %v789_v11 = vmax.f32 %v773_v6, 0.0 }
 0x294   : > { %v786_v3 = vmax.f32 %v770_v63, 0.0  ;;  %v1099_v8 = vpack.c.bf16 %v782_v59, %v781_v56  ;;  %v1104_v9 = vpack.c.bf16 %v784_v61, %v783_v60  ;;  %v788_v10 = vmax.f32 %v772_v4, 0.0  ;;  %v775_v12 = vld [vmem:[#allocation2 + $0x60] sm:$0xff]  ;;  %v777_v14 = vld [vmem:[#allocation2 + $0x78] sm:$0xff]  ;;  %v778_v19 = vld [vmem:[#allocation2 + $0x28] sm:$0xff] }
 0x295   : > { %1095 = vst [vmem:[%s1901_s12] sm:$0xff] %v1094_v1   ;;  %v790_v16 = vmax.f32 %v774_v7, 0.0  ;;  %v791_v17 = vmax.f32 %v775_v12, 0.0  ;;  %v793_v21 = vmax.f32 %v777_v14, 0.0  ;;  %v794_v22 = vmax.f32 %v778_v19, 0.0 }
 0x296   : > { %v776_v13 = vld [vmem:[#allocation2 + $0x70] sm:$0xff]  ;;  %v1109_v15 = vpack.c.bf16 %v786_v3, %v785_v2  ;;  %1131 = vst [vmem:[%s1901_s12 + $0x8] sm:$0xff] %v1099_v8   ;;  %1132 = vst [vmem:[%s1901_s12 + $0x10] sm:$0xff] %v1104_v9   ;;  %v1114_v20 = vpack.c.bf16 %v788_v10, %v787_v5 }
 0x297   : > { %v792_v18 = vmax.f32 %v776_v13, 0.0  ;;  %v1119_v23 = vpack.c.bf16 %v790_v16, %v789_v11  ;;  %v1129_v25 = vpack.c.bf16 %v794_v22, %v793_v21 }
 0x298   : > { %1133 = vst [vmem:[%s1901_s12 + $0x18] sm:$0xff] %v1109_v15   ;;  %1134 = vst [vmem:[%s1901_s12 + $0x20] sm:$0xff] %v1114_v20  }
 0x299   : > { %v1124_v24 = vpack.c.bf16 %v792_v18, %v791_v17  ;;  %1135 = vst [vmem:[%s1901_s12 + $0x28] sm:$0xff] %v1119_v23   ;;  %1137 = vst [vmem:[%s1901_s12 + $0x38] sm:$0xff] %v1129_v25  }
 0x29b   : > { %1136 = vst [vmem:[%s1901_s12 + $0x30] sm:$0xff] %v1124_v24  }
 0x29c PF: > { %s2076_s24 = sld [smem:[#allocation17_spill]]  ;;  %s889_s6 = sshll.u32 %s1901_s12, 4  ;;  %s1939_s6 = int_to_ptr.vmem [resolvable:$true] %s889_s6 }
 0x29d   : > { %s2078_s9 = sld [smem:[#allocation20_spill]]  ;;  %s1943_s11 = scalar_lea.sflag [#allocation5], %s283_s29 }
 0x29e   : > { %s2079_s10 = sld [smem:[#allocation25_spill]]  ;;  %s1488_s30 = scalar_lea.vmem %s1939_s6, 1024 }
 0x29f   : > { %p1489_p5 = scmp.ne.s32.totalorder %s1939_s6, %s1488_s30  ;;  %s1649_s14 = smov [#allocation9]  }
 0x2a0   : > { %s1492_s5 = sshll.u32 %s1649_s14, 4  ;;  %s1493_s5 = int_to_ptr.vmem [resolvable:$false] %s1492_s5 }
 0x2a1   : > { %s1494_s2 = scalar_lea.vmem %s1493_s5, 2048  ;;  %p1495_p9 = scmp.lt.s32.totalorder %s1939_s6, %s1493_s5 }
 0x2a2   : > { %s1090_s25 = sshll.u32 %s2076_s24, 10  ;;  %p1496_p4 = scmp.lt.s32.totalorder %s1494_s2, %s1488_s30 }
 0x2a3   : > { %p2080_p11 = scmp.ne.s32.totalorder %s2078_s9, 0 }
 0x2a4   : > { %s1936_s16 = scalar_lea.hbm %s2079_s10, %s1090_s25  ;;  %p1497_p12 = por %p1496_p4, %p1495_p9 }
 0x2a5   : > { %p1490_p0 = pnand %p1489_p5, %p2080_p11 }
 0x2a7   : > { %p1491_p8 = pneg %p1490_p0 }
 0x2a9   : > { %p1498_p6 = pnand %p1497_p12, %p1491_p8 }
 0x2ab   : > { %1501 = shalt.err (!%p1498_p6)
}
 0x2ac   : > { %s1502_s29 = scalar_lea.hbm %s1936_s16, 1024  ;;  %s1506_s24 = scalar_lea.hbm %s2079_s10, 2048 }
 0x2ad   : > { %p1503_p7 = scmp.ne.s32.totalorder %s1936_s16, %s1502_s29  ;;  %p1507_p10 = scmp.lt.s32.totalorder %s1936_s16, %s2079_s10 }
 0x2ae   : > { %p1508_p3 = scmp.lt.s32.totalorder %s1506_s24, %s1502_s29 }
 0x2af   : > { %p1504_p13 = pnand %p1503_p7, %p2080_p11 }
 0x2b0   : > { %p1509_p1 = por %p1508_p3, %p1507_p10 }
 0x2b1   : > { %p1505_p2 = pneg %p1504_p13 }
 0x2b3   : > { %p1510_p5 = pnand %p1509_p1, %p1505_p2 }
 0x2b5   : > { %1513 = shalt.err (!%p1510_p5)
}
 0x2b6   : > { %s1650_s7 = smov 64   ;;  %s1651_s8 = smov 4  }
 0x2b7   : > { %1242 = dma.vmem_to_hbm [thread:$0]  (%p2080_p11), %s1939_s6, 1024, %s1936_s16, %s1943_s11, %s1650_s7, %s1650_s7, %s1651_s8  }
 0x2b8 PF: > { %s2081_s30 = sld [smem:[#allocation14_spill]]  ;;  %p1262_p0 = scmp.ge.s32.totalorder %s1640_s28, 2 }
 0x2b9   : > { %s2082_s14 = sld [smem:[#allocation21_spill]] }
 0x2be   : > { %s904_s5 = sand.u32 1, %s2081_s30  }
 0x2bf   : > { %p2083_p8 = scmp.ne.s32.totalorder %s2082_s14, 0  ;;  %s905_s2 = scalar_lea.sflag [#allocation5], %s904_s5 }
 0x2c1   : > { %p1256_p9 = pnand %p1262_p0, %p2083_p8 }
 0x2c3   : > { %p1257_p4 = pneg %p1256_p9 }
 0x2c5   : > { %1583 = dma.done.wait (%p1257_p4), %s905_s2, 1024  }
 0x2c6   : > { %1585 = vsyncadd (%p1257_p4), %s905_s2, 4294966272  ;;  %s23_s28 = sadd.s32 1, %s1640_s28   ;;  %s2085_s9 = sld [smem:[#allocation15_spill]] }
 0x2c7   : > { %p1971_p12 = scmp.ge.s32.totalorder %s23_s28, 6   ;;  %s2086_s6 = smov %s1823_s15 }
 0x2c8   : > { %s2087_s11 = sld [smem:[#allocation22_spill]]  ;;  %s2089_s16 = smov %s1596_s17 }
 0x2c9   : > { %s2090_s17 = smov %s2086_s6  ;;  %s2091_s18 = smov %s1604_s19 }
 0x2ca   : > { %s2092_s19 = smov %s1608_s20  ;;  %s2093_s20 = smov %s1853_s21 }
 0x2cb   : > { %s2094_s21 = smov %s1616_s22  ;;  %s2095_s22 = smov %s1620_s23 }
 0x2cc   : > { %s2088_s15 = smov %s2085_s9  ;;  %s2096_s23 = smov %s1826_s4 }
 0x2cd   : > { %s2097_s24 = smov %s1632_s26  ;;  %s2098_s25 = smov %s1636_s27 }
 0x2ce   : > { %s2099_s26 = smov %s2087_s11  ;;  %s2100_s27 = smov %s2106_s13 }
 0x2cf   :  { %22 = sbr.rel (!%p1971_p12) target bundleno = 16 (0x10), region = 106 }
 0x2d4   :  { %910 = vsyncpa [#allocation4], 1 }
 0x2d5   :  { %912 = vsyncpa [#allocation4 + $0x1], 1 }
 0x2d6   :  { %913 = vsyncpa [#allocation7], 1 }
 0x2d7   :  { %915 = vsyncpa [#allocation7 + $0x1], 1 }
 0x2d8   :  { %916 = vsyncpa [#allocation5], 1 }
 0x2d9   :  { %918 = vsyncpa [#allocation5 + $0x1], 1 }

</bundles_post_ra>
